<compile_context>
chip_gen: v7x
topology: tpu7x:2x2x1
jax: 0.10.0
libtpu: 0.0.40
codegen_flags: <defaults>
</compile_context>

<pallas_src>
import math

import jax
import jax.numpy as jnp
from jax import lax
from jax.experimental import pallas as pl
from jax.experimental.pallas import tpu as pltpu


def _round_up(a, m):
    return ((a + m - 1) // m) * m


# ---------------------------------------------------------------------------
# Kernels
# ---------------------------------------------------------------------------

def _neg_cdist_kernel_multi_k(x_ref, w_ref, xsq_ref, wsq_ref, o_ref, acc_ref):
    """Grid = (i: N tiles, j: R tiles, k: M tiles); k is the reduction axis."""
    k = pl.program_id(2)

    @pl.when(k == 0)
    def _():
        acc_ref[...] = jnp.zeros_like(acc_ref)

    # MXU: contract x (TP, TM) with w (TR, TM) on M.  Operands stay in their
    # native dtype (on v5e f32 takes the compiler's multi-pass path); f32 acc.
    acc_ref[...] += lax.dot_general(
        x_ref[...], w_ref[...],
        dimension_numbers=(((1,), (1,)), ((), ())),
        preferred_element_type=jnp.float32,
    )

    @pl.when(k == pl.num_programs(2) - 1)
    def _():
        # ||x - w||^2 = ||x||^2 + ||w||^2 - 2 x.w  (both norms hoisted, f32)
        d2 = xsq_ref[...] + wsq_ref[...] - 2.0 * acc_ref[...]
        o_ref[...] = (-jnp.sqrt(jnp.maximum(d2, 0.0))).astype(o_ref.dtype)


def _neg_cdist_kernel_single_k(x_ref, w_ref, xsq_ref, wsq_ref, o_ref):
    """Whole feature dim in one tile: no accumulator scratch, no branches."""
    xw = lax.dot_general(
        x_ref[...], w_ref[...],
        dimension_numbers=(((1,), (1,)), ((), ())),
        preferred_element_type=jnp.float32,
    )
    d2 = xsq_ref[...] + wsq_ref[...] - 2.0 * xw
    o_ref[...] = (-jnp.sqrt(jnp.maximum(d2, 0.0))).astype(o_ref.dtype)


# ---------------------------------------------------------------------------
# Tile selection
# ---------------------------------------------------------------------------

def _working_set_bytes(tp, tr, tm, itemsize):
    return (2 * tp * tm * itemsize        # x tile, double buffered
            + 2 * tr * tm * itemsize      # w tile, double buffered
            + 2 * tp * 4 + 2 * tr * 4     # ||x||^2, ||w||^2 tiles
            + 2 * tp * tr * itemsize      # out tile, double buffered
            + tp * tr * 4)                # f32 accumulator scratch


def _choose_tiles(n_rows, r, m, itemsize, vmem_budget_bytes):
    sub = max(8, 32 // itemsize)          # sublane granularity: 8 f32, 16 bf16
    r_lane = _round_up(r, 128)
    m_lane = _round_up(m, 128)

    # Start generous: large MXU-friendly TP, weight resident along R, full
    # feature dim in a single k step.  Shrink to fit the VMEM budget.
    tp_target = 512 if itemsize >= 4 else 1024
    tp = min(_round_up(n_rows, sub), tp_target)
    tr = min(r_lane, 2048)
    tm = min(m_lane, 2048)

    while _working_set_bytes(tp, tr, tm, itemsize) > vmem_budget_bytes:
        if tm > 512:
            tm = _round_up(tm // 2, 128)
        elif tr > 256:
            tr = _round_up(tr // 2, 128)
        elif tp > 256:
            tp = _round_up(tp // 2, sub)
        elif tm > 128:
            tm = _round_up(tm // 2, 128)
        elif tr > 128:
            tr = _round_up(tr // 2, 128)
        elif tp > sub:
            tp = _round_up(tp // 2, sub)
        else:
            break
    return tp, tr, tm


# ---------------------------------------------------------------------------
# Wrapper
# ---------------------------------------------------------------------------

def neg_cdist(x, weight, p=2.0, *, tp=None, tr=None, tm=None,
              vmem_budget_bytes=40 * 1024 * 1024):
    """Pallas equivalent of -torch.cdist(x, weight, p=2)."""
    assert p == 2.0, "kernel implements p=2 (Euclidean) distance"
    # TODO(synk): general p != 2 would need an elementwise |x - w|^p reduction path.

    lead = x.shape[:-1]                    # (..., P)
    M = x.shape[-1]
    R, Mw = weight.shape
    assert M == Mw

    # Collapse batch dims into one long row axis.
    N = math.prod(lead) if lead else 1
    x2 = x.reshape(N, M)

    itemsize = jnp.dtype(x.dtype).itemsize
    TP, TR, TM = _choose_tiles(N, R, M, itemsize, vmem_budget_bytes)
    if tp is not None:
        TP = tp
    if tr is not None:
        TR = tr
    if tm is not None:
        TM = tm

    N_pad = _round_up(N, TP)
    R_pad = _round_up(R, TR)
    M_pad = _round_up(M, TM)

    # Zero padding: padded M columns contribute 0 to every distance; padded
    # rows/columns are sliced away below (their d2 >= 0, so no NaNs).
    x_p = jnp.pad(x2, ((0, N_pad - N), (0, M_pad - M)))
    w_p = jnp.pad(weight, ((0, R_pad - R), (0, M_pad - M)))

    # Hoisted exact-f32 squared norms.
    x_f32 = x_p.astype(jnp.float32)
    x_sq = jnp.sum(x_f32 * x_f32, axis=-1, keepdims=True)       # (N_pad, 1)
    w_f32 = w_p.astype(jnp.float32)
    w_sq = jnp.sum(w_f32 * w_f32, axis=-1)[None, :]              # (1, R_pad)

    n_i = N_pad // TP
    n_j = R_pad // TR
    n_k = M_pad // TM
    grid = (n_i, n_j, n_k)

    if n_k == 1:
        kernel = _neg_cdist_kernel_single_k
        scratch = []
    else:
        kernel = _neg_cdist_kernel_multi_k
        scratch = [pltpu.VMEM((TP, TR), jnp.float32)]

    # Actual VMEM requirement + headroom (don't blanket-request 64 MiB on v7x).
    ws = _working_set_bytes(TP, TR, TM, itemsize)
    vmem_limit = min(ws + (8 << 20), 128 * 1024 * 1024)

    # bytes_accessed reflects actual traffic: x is re-read once per R tile and
    # w once per N tile under this schedule.
    cost = pl.CostEstimate(
        flops=2 * N_pad * R_pad * M_pad + 4 * N_pad * R_pad,
        transcendentals=N_pad * R_pad,
        bytes_accessed=(n_j * N_pad * M_pad * itemsize
                        + n_i * R_pad * M_pad * itemsize
                        + n_j * N_pad * 4 + n_i * R_pad * 4
                        + N_pad * R_pad * itemsize),
    )

    out = pl.pallas_call(
        kernel,
        out_shape=jax.ShapeDtypeStruct((N_pad, R_pad), x.dtype),
        grid_spec=pltpu.PrefetchScalarGridSpec(
            num_scalar_prefetch=0,
            grid=grid,
            in_specs=[
                pl.BlockSpec((TP, TM), lambda i, j, k: (i, k)),   # x
                pl.BlockSpec((TR, TM), lambda i, j, k: (j, k)),   # w
                pl.BlockSpec((TP, 1), lambda i, j, k: (i, 0)),    # ||x||^2
                pl.BlockSpec((1, TR), lambda i, j, k: (0, j)),    # ||w||^2
            ],
            out_specs=pl.BlockSpec((TP, TR), lambda i, j, k: (i, j)),
            scratch_shapes=scratch,
        ),
        compiler_params=pltpu.CompilerParams(
            dimension_semantics=("parallel", "parallel", "arbitrary"),
            vmem_limit_bytes=vmem_limit,
        ),
        cost_estimate=cost,
    )(x_p, w_p, x_sq, w_sq)

    return out[:N, :R].reshape(*lead, R)


if __name__ == "__main__":
    key = jax.random.PRNGKey(0)
    k_x, k_w = jax.random.split(key)

    B, P, M, R = 2, 16, 32, 8          # small shapes consistent with cdist semantics
    p = 2.0

    x = jax.random.normal(k_x, (B, P, M), dtype=jnp.float32)
    # Deterministic "parameter" with weight_size = (R, M), as in the module __init__.
    weight = jax.random.normal(k_w, (R, M), dtype=jnp.float32)

    out = neg_cdist(x, weight, p=p)
    out = jax.block_until_ready(out)

    # Reference check in plain JAX (direct-difference path).
    ref = -jnp.sqrt(
        jnp.maximum(
            jnp.sum((x[:, :, None, :] - weight[None, None, :, :]) ** 2, axis=-1),
            0.0,
        )
    )
    assert out.shape == (B, P, R)
    assert jnp.allclose(out, ref, atol=1e-4, rtol=1e-4), "mismatch vs reference"

    print("KERNEL_OK")
</pallas_src>

<mosaic_0001>
module attributes {stable_mosaic.version = 11 : i64} {
  func.func @_neg_cdist_kernel_single_k(%arg0: i32, %arg1: i32, %arg2: i32, %arg3: memref<32x128xf32, #tpu.memory_space<vmem>>, %arg4: memref<128x128xf32, #tpu.memory_space<vmem>>, %arg5: memref<32x1xf32, #tpu.memory_space<vmem>>, %arg6: memref<1x128xf32, #tpu.memory_space<vmem>>, %arg7: memref<32x128xf32, #tpu.memory_space<vmem>>) attributes {dimension_semantics = [#tpu.dimension_semantics<parallel>, #tpu.dimension_semantics<parallel>, #tpu.dimension_semantics<arbitrary>], iteration_bounds = array<i64: 1, 1, 1>, scalar_prefetch = 0 : i64, scratch_operands = 0 : i64, tpu.core_type = #tpu.core_type<tc>, window_params = [{transform_indices = @transform_0, window_bounds = array<i64: 32, 128>}, {transform_indices = @transform_1, window_bounds = array<i64: 128, 128>}, {transform_indices = @transform_2, window_bounds = array<i64: 32, 1>}, {transform_indices = @transform_3, window_bounds = array<i64: 1, 128>}, {transform_indices = @transform_4, window_bounds = array<i64: 32, 128>}]} {
    %c0 = arith.constant 0 : index
    %c0_0 = arith.constant 0 : index
    %0 = vector.load %arg3[%c0, %c0_0] : memref<32x128xf32, #tpu.memory_space<vmem>>, vector<32x128xf32>
    %c0_1 = arith.constant 0 : index
    %c0_2 = arith.constant 0 : index
    %1 = vector.load %arg4[%c0_1, %c0_2] : memref<128x128xf32, #tpu.memory_space<vmem>>, vector<128x128xf32>
    %cst = arith.constant dense<0.000000e+00> : vector<32x128xf32>
    %2 = tpu.matmul %0, %1, %cst {dimension_numbers = #tpu.dot_dimension_numbers<[1], [1], [0], [0], [0, 0, 1, 0], [], []>} : vector<32x128xf32>, vector<128x128xf32>, vector<32x128xf32> -> vector<32x128xf32>
    %c0_3 = arith.constant 0 : index
    %c0_4 = arith.constant 0 : index
    %3 = vector.load %arg5[%c0_3, %c0_4] : memref<32x1xf32, #tpu.memory_space<vmem>>, vector<32x1xf32>
    %c0_5 = arith.constant 0 : index
    %c0_6 = arith.constant 0 : index
    %4 = vector.load %arg6[%c0_5, %c0_6] : memref<1x128xf32, #tpu.memory_space<vmem>>, vector<1x128xf32>
    %5 = vector.broadcast %3 : vector<32x1xf32> to vector<32x128xf32>
    %6 = vector.broadcast %4 : vector<1x128xf32> to vector<32x128xf32>
    %7 = arith.addf %5, %6 : vector<32x128xf32>
    %cst_7 = arith.constant 2.000000e+00 : f32
    %8 = vector.broadcast %cst_7 : f32 to vector<32x128xf32>
    %9 = arith.mulf %8, %2 : vector<32x128xf32>
    %10 = arith.subf %7, %9 : vector<32x128xf32>
    %cst_8 = arith.constant 0.000000e+00 : f32
    %11 = vector.broadcast %cst_8 : f32 to vector<32x128xf32>
    %12 = arith.maximumf %10, %11 : vector<32x128xf32>
    %13 = math.sqrt %12 : vector<32x128xf32>
    %cst_9 = arith.constant 0.000000e+00 : f32
    %14 = vector.broadcast %cst_9 : f32 to vector<32x128xf32>
    %15 = arith.subf %14, %13 : vector<32x128xf32>
    %c0_10 = arith.constant 0 : index
    %c0_11 = arith.constant 0 : index
    %16 = vector.load %arg7[%c0_10, %c0_11] : memref<32x128xf32, #tpu.memory_space<vmem>>, vector<32x128xf32>
    tpu.vector_store %arg7[%c0_10, %c0_11], %15 {strides = array<i32>} : memref<32x128xf32, #tpu.memory_space<vmem>>, vector<32x128xf32>,
    return
  }
  func.func @transform_0(%arg0: i32, %arg1: i32, %arg2: i32) -> (i32, i32) {
    %c0_i32 = arith.constant 0 : i32
    return %arg0, %arg2 : i32, i32
  }
  func.func @transform_1(%arg0: i32, %arg1: i32, %arg2: i32) -> (i32, i32) {
    %c0_i32 = arith.constant 0 : i32
    return %arg1, %arg2 : i32, i32
  }
  func.func @transform_2(%arg0: i32, %arg1: i32, %arg2: i32) -> (i32, i32) {
    %c0_i32 = arith.constant 0 : i32
    %c0_i32_0 = arith.constant 0 : i32
    return %arg0, %c0_i32 : i32, i32
  }
  func.func @transform_3(%arg0: i32, %arg1: i32, %arg2: i32) -> (i32, i32) {
    %c0_i32 = arith.constant 0 : i32
    %c0_i32_0 = arith.constant 0 : i32
    return %c0_i32, %arg1 : i32, i32
  }
  func.func @transform_4(%arg0: i32, %arg1: i32, %arg2: i32) -> (i32, i32) {
    %c0_i32 = arith.constant 0 : i32
    return %arg0, %arg1 : i32, i32
  }
}

</mosaic_0001>

<bundles_post_ra>
// kernel: tpu_custom_call.1
= control target key start
LH: loop header
LB: loop body
LE: loop exit
PB: predicated region body
PF: predicated region fallthrough
CT: control target
= control target key end

     0   :  { %9 = vsyncpa [#allocation3], 0  ;;  %s497_s0 = inlined_call_operand.vmem [shape: f32[32,128], index: 0, kind: input, shape index: {}]   ;;  %s498_s1 = inlined_call_operand.hbm [shape: f32[128,128], index: 1, kind: input, shape index: {}]   ;;  %s499_s2 = inlined_call_operand.vmem [shape: f32[32,1], index: 2, kind: input, shape index: {}]   ;;  %s500_s3 = inlined_call_operand.vmem [shape: f32[1,128], index: 3, kind: input, shape index: {}]   ;;  %s501_s4 = inlined_call_operand.hbm [shape: f32[32,128], index: 4, kind: output, shape index: {}]  }
   0x1   :  { %10 = vsyncpa [#allocation4], 0  ;;  %s407_s15 = smov [#allocation2]   ;;  %s359_s19 = scalar_lea.hbm %s498_s1, 2048 }
   0x2   :  { %s18_s16 = sshll.u32 %s407_s15, 4  ;;  %p360_p0 = scmp.ne.s32.totalorder %s498_s1, %s359_s19  ;;  %s19_s16 = int_to_ptr.vmem [resolvable:$true] %s18_s16 }
   0x3   :  { %p363_p1 = scmp.lt.u32.totalorder %s359_s19, %s498_s1 }
   0x5   :  { %p365_p2 = pnand %p363_p1, %p360_p0 }
   0x7   :  { %368 = shalt.err (!%p365_p2)
}
   0x8   :  { %s369_s24 = scalar_lea.vmem %s19_s16, 2048  ;;  %p374_p4 = scmp.lt.s32.totalorder %s19_s16, %s19_s16 }
   0x9   :  { %p370_p3 = scmp.ne.s32.totalorder %s19_s16, %s369_s24  ;;  %p375_p5 = scmp.lt.s32.totalorder %s369_s24, %s369_s24 }
   0xb   :  { %p376_p6 = por %p375_p5, %p374_p4 }
   0xd   :  { %p377_p7 = pnand %p376_p6, %p370_p3 }
   0xf   :  { %380 = shalt.err (!%p377_p7)
}
  0x10   :  { %s408_s25 = smov 128   ;;  %s409_s26 = smov 8  }
  0x11   :  { %24 = dma.hbm_to_vmem [thread:$0]  %s498_s1, 2048, %s19_s16, [#allocation3], %s408_s25, %s408_s25, %s409_s26  }
  0x12   :  { %403 = dma.done.wait [#allocation3], 2048  }
  0x13   :  { %404 = vsyncadd [#allocation3], 4294965248  ;;  %v410_v0 = vmov 0   ;;  %v36_v1 = vld [vmem:[#allocation2] sm:$0xff]  ;;  %v37_v2 = vld [vmem:[#allocation2 + $0x8] sm:$0xff] }
  0x14   :  { %350 = vset.pattern.permute.xlu1 %v410_v0  ;;  %349 = vset.pattern.permute.xlu0 %v410_v0  ;;  %v38_v3 = vld [vmem:[#allocation2 + $0x10] sm:$0xff]  ;;  %v296_v4 = vpack.c.bf16 %v37_v2, %v36_v1  ;;  %v39_v5 = vld [vmem:[#allocation2 + $0x18] sm:$0xff]  ;;  %v32_v7 = vld [vmem:[%s497_s0] sm:$0xff] }
  0x15   :  { %v300_v6 = vpack.c.bf16 %v39_v5, %v38_v3  ;;  %v34_v8 = vld [vmem:[%s497_s0 + $0x10] sm:$0xff]  ;;  %v40_v9 = vld [vmem:[#allocation2 + $0x20] sm:$0xff]  ;;  %v41_v10 = vld [vmem:[#allocation2 + $0x28] sm:$0xff]  ;;  %290 = vmatprep.mubr.f32.mxu0 %v32_v7 }
  0x16   :  { %297 = vmatprep.subr.bf16.mxu0 %v296_v4  ;;  %328 = vmatprep.subr.bf16.mxu1 %v296_v4  ;;  %v139_v11 = vld [vmem:[%s499_s2 + $0x10] sm:$0xff]  ;;  %v137_v12 = vld [vmem:[%s499_s2] sm:$0xff]  ;;  %v140_v13 = vld [vmem:[%s499_s2 + $0x18] sm:$0xff]  ;;  %v304_v14 = vpack.c.bf16 %v41_v10, %v40_v9 }
  0x17   :  { %299 = vmatpush3.bf16.xpose.msra.mxu0 %v296_v4  ;;  %336 = vmatpush3.bf16.xpose.msra.mxu1 %v296_v4  ;;  %v138_v15 = vld [vmem:[%s499_s2 + $0x8] sm:$0xff]  ;;  %v42_v16 = vld [vmem:[#allocation2 + $0x30] sm:$0xff]  ;;  %v43_v17 = vld [vmem:[#allocation2 + $0x38] sm:$0xff] }
  0x18   :  { %301 = vmatprep.subr.bf16.mxu0 %v300_v6  ;;  %329 = vmatprep.subr.bf16.mxu1 %v300_v6  ;;  %v308_v18 = vpack.c.bf16 %v43_v17, %v42_v16  ;;  %v44_v19 = vld [vmem:[#allocation2 + $0x40] sm:$0xff]  ;;  %v45_v20 = vld [vmem:[#allocation2 + $0x48] sm:$0xff]  ;;  %v46_v22 = vld [vmem:[#allocation2 + $0x50] sm:$0xff] }
  0x19   :  { %293 = vmatprep.mubr.f32.mxu1 %v34_v8  ;;  %154 = vperm.xlu1 %350, %v139_v11   ;;  %v312_v21 = vpack.c.bf16 %v45_v20, %v44_v19  ;;  %v47_v23 = vld [vmem:[#allocation2 + $0x58] sm:$0xff]  ;;  %v48_v25 = vld [vmem:[#allocation2 + $0x60] sm:$0xff]  ;;  %v49_v26 = vld [vmem:[#allocation2 + $0x68] sm:$0xff] }
  0x1a   :  { %144 = vperm.xlu0 %349, %v137_v12   ;;  %v316_v24 = vpack.c.bf16 %v47_v23, %v46_v22  ;;  %v320_v27 = vpack.c.bf16 %v49_v26, %v48_v25  ;;  %v50_v28 = vld [vmem:[#allocation2 + $0x70] sm:$0xff]  ;;  %v51_v29 = vld [vmem:[#allocation2 + $0x78] sm:$0xff]  ;;  %v33_v31 = vld [vmem:[%s497_s0 + $0x8] sm:$0xff] }
  0x1b   :  { %v324_v30 = vpack.c.bf16 %v51_v29, %v50_v28  ;;  %v35_v32 = vld [vmem:[%s497_s0 + $0x18] sm:$0xff]  ;;  %v237_v35 = vld [vmem:[%s500_s3] ss:$0 sm:$0xff]  ;;  %s411_s0 = smov [#allocation5]  }
  0x1c   :  { %s225_s3 = sshll.u32 %s411_s0, 4  ;;  %s226_s3 = int_to_ptr.vmem [resolvable:$true] %s225_s3 }
  0x1d   :  { %159 = vperm.xlu1 %350, %v140_v13   ;;  %s381_s19 = scalar_lea.vmem %s226_s3, 512  ;;  %p386_p9 = scmp.lt.s32.totalorder %s226_s3, %s226_s3 }
  0x1e   :  { %149 = vperm.xlu0 %349, %v138_v15   ;;  %p382_p8 = scmp.ne.s32.totalorder %s226_s3, %s381_s19  ;;  %p387_p10 = scmp.lt.s32.totalorder %s381_s19, %s381_s19 }
  0x1f   :  { %303 = vmatpush3.bf16.xpose.msra.mxu0 %v300_v6  ;;  %337 = vmatpush3.bf16.xpose.msra.mxu1 %v300_v6 }
  0x20   :  { %305 = vmatprep.subr.bf16.mxu0 %v304_v14  ;;  %330 = vmatprep.subr.bf16.mxu1 %v304_v14  ;;  %p388_p11 = por %p387_p10, %p386_p9 }
  0x22   :  { %p389_p12 = pnand %p388_p11, %p382_p8 }
  0x27   :  { %307 = vmatpush3.bf16.xpose.msra.mxu0 %v304_v14  ;;  %338 = vmatpush3.bf16.xpose.msra.mxu1 %v304_v14 }
  0x28   :  { %309 = vmatprep.subr.bf16.mxu0 %v308_v18  ;;  %331 = vmatprep.subr.bf16.mxu1 %v308_v18 }
  0x2f   :  { %311 = vmatpush3.bf16.xpose.msra.mxu0 %v308_v18  ;;  %339 = vmatpush3.bf16.xpose.msra.mxu1 %v308_v18 }
  0x30   :  { %313 = vmatprep.subr.bf16.mxu0 %v312_v21  ;;  %332 = vmatprep.subr.bf16.mxu1 %v312_v21 }
  0x37   :  { %315 = vmatpush3.bf16.xpose.msra.mxu0 %v312_v21  ;;  %340 = vmatpush3.bf16.xpose.msra.mxu1 %v312_v21 }
  0x38   :  { %317 = vmatprep.subr.bf16.mxu0 %v316_v24  ;;  %333 = vmatprep.subr.bf16.mxu1 %v316_v24 }
  0x3f   :  { %319 = vmatpush3.bf16.xpose.msra.mxu0 %v316_v24  ;;  %341 = vmatpush3.bf16.xpose.msra.mxu1 %v316_v24 }
  0x40   :  { %321 = vmatprep.subr.bf16.mxu0 %v320_v27  ;;  %334 = vmatprep.subr.bf16.mxu1 %v320_v27 }
  0x47   :  { %323 = vmatpush3.bf16.xpose.msra.mxu0 %v320_v27  ;;  %342 = vmatpush3.bf16.xpose.msra.mxu1 %v320_v27 }
  0x48   :  { %325 = vmatprep.subr.bf16.mxu0 %v324_v30  ;;  %335 = vmatprep.subr.bf16.mxu1 %v324_v30 }
  0x4f   :  { %327 = vmatpush3.bf16.xpose.msra.mxu0 %v324_v30  ;;  %343 = vmatpush3.bf16.xpose.msra.mxu1 %v324_v30 }
  0x56   :  { %291 = vmatmul.mubr.f32.vlgmr.msra.gmra.mrb[0].mxu0 %v33_v31  ;;  %294 = vmatmul.mubr.f32.vlgmr.msra.gmra.mrb[0].mxu1 %v35_v32 }
  0x98   :  { %v155_v33 = vpop.permute.xlu1 %154 }
  0x99   :  { %v145_v34 = vpop.permute.xlu0 %144  ;;  %v170_v46 = vadd.f32 %v237_v35, %v155_v33 }
  0x9a   :  { %v168_v47 = vadd.f32 %v237_v35, %v145_v34 }
  0x9c   :  { %v160_v36 = vpop.permute.xlu1 %159 }
  0x9d   :  { %v150_v37 = vpop.permute.xlu0 %149  ;;  %v171_v40 = vadd.f32 %v237_v35, %v160_v36 }
  0x9e   :  { %v169_v41 = vadd.f32 %v237_v35, %v150_v37 }
 0x129   :  { %v292_v38 = vpop.f32.mrb[0].mxu0  ;;  %v295_v39 = vpop.f32.mrb[0].mxu1 }
 0x12a   :  { %v173_v42 = vmul.f32 2.0, %v292_v38  ;;  %v175_v43 = vmul.f32 2.0, %v295_v39  ;;  %v118_v44 = vpop.f32.mrb[1].mxu0  ;;  %v128_v45 = vpop.f32.mrb[1].mxu1 }
 0x12b   :  { %v172_v48 = vmul.f32 2.0, %v118_v44  ;;  %v174_v49 = vmul.f32 2.0, %v128_v45 }
 0x12c   :  { %v177_v50 = vsub.f32 %v169_v41, %v173_v42  ;;  %v179_v51 = vsub.f32 %v171_v40, %v175_v43 }
 0x12d   :  { %v176_v52 = vsub.f32 %v168_v47, %v172_v48  ;;  %v178_v53 = vsub.f32 %v170_v46, %v174_v49 }
 0x12e   :  { %v181_v54 = vmax.f32 %v177_v50, 0.0  ;;  %v183_v55 = vmax.f32 %v179_v51, 0.0 }
 0x12f   :  { %v180_v56 = vmax.f32 %v176_v52, 0.0  ;;  %v182_v57 = vmax.f32 %v178_v53, 0.0 }
 0x130   :  { %351 = vrsqrt.f32 %v181_v54  ;;  %vm193_vm0 = vcmp.eq.f32.partialorder %v181_v54, inf  ;;  %vm195_vm2 = vcmp.eq.f32.partialorder %v181_v54, 0.0  ;;  %v196_v61 = vand.u32 2147483648, %v181_v54 }
 0x131   :  { %353 = vrsqrt.f32 %v183_v55  ;;  %vm186_vm1 = vcmp.eq.f32.partialorder %v180_v56, inf  ;;  %vm188_vm3 = vcmp.eq.f32.partialorder %v180_v56, 0.0  ;;  %v189_v63 = vand.u32 2147483648, %v180_v56 }
 0x132   :  { %355 = vrsqrt.f32 %v180_v56  ;;  %vm200_vm4 = vcmp.eq.f32.partialorder %v182_v57, inf  ;;  %vm207_vm5 = vcmp.eq.f32.partialorder %v183_v55, inf  ;;  %v210_v4 = vand.u32 2147483648, %v183_v55 }
 0x133   :  { %357 = vrsqrt.f32 %v182_v57  ;;  %vm209_vm6 = vcmp.eq.f32.partialorder %v183_v55, 0.0  ;;  %v203_v9 = vand.u32 2147483648, %v182_v57  ;;  %vm202_vm7 = vcmp.eq.f32.partialorder %v182_v57, 0.0 }
 0x13a   :  { %v352_v58 = vpop.eup %351 }
 0x13b   :  { %v354_v59 = vpop.eup %353  ;;  %v192_v60 = vmul.f32 %v352_v58, %v181_v54 }
 0x13c   :  { %v356_v62 = vpop.eup %355  ;;  %v206_v0 = vmul.f32 %v354_v59, %v183_v55 }
 0x13d   :  { %v358_v1 = vpop.eup %357  ;;  %v185_v2 = vmul.f32 %v356_v62, %v180_v56  ;;  %v194_v3 = vsel %vm193_vm0, %v181_v54, %v192_v60 }
 0x13e   :  { %v197_v5 = vsel %vm195_vm2, %v196_v61, %v194_v3  ;;  %v199_v6 = vmul.f32 %v358_v1, %v182_v57  ;;  %v208_v7 = vsel %vm207_vm5, %v183_v55, %v206_v0 }
 0x13f   :  { %v187_v8 = vsel %vm186_vm1, %v180_v56, %v185_v2  ;;  %v211_v10 = vsel %vm209_vm6, %v210_v4, %v208_v7  ;;  %v213_v11 = vsub.f32 0.0, %v197_v5 }
 0x140   :  { %v190_v12 = vsel %vm188_vm3, %v189_v63, %v187_v8  ;;  %v201_v13 = vsel %vm200_vm4, %v182_v57, %v199_v6  ;;  %v215_v14 = vsub.f32 0.0, %v211_v10 }
 0x141   :  { %v204_v15 = vsel %vm202_vm7, %v203_v9, %v201_v13  ;;  %v212_v16 = vsub.f32 0.0, %v190_v12  ;;  %217 = vst [vmem:[#allocation5 + $0x8] sm:$0xff] %v213_v11 }
 0x142   :  { %v214_v17 = vsub.f32 0.0, %v204_v15  ;;  %219 = vst [vmem:[#allocation5 + $0x18] sm:$0xff] %v215_v14 }
 0x143   :  { %216 = vst [vmem:[#allocation5] sm:$0xff] %v212_v16 }
 0x144   :  { %218 = vst [vmem:[#allocation5 + $0x10] sm:$0xff] %v214_v17 }
 0x145   :  { %392 = shalt.err (!%p389_p12)
}
 0x146   :  { %s393_s22 = scalar_lea.hbm %s501_s4, 512 }
 0x147   :  { %p394_p13 = scmp.ne.s32.totalorder %s501_s4, %s393_s22  ;;  %p397_p0 = scmp.lt.u32.totalorder %s393_s22, %s501_s4 }
 0x149   :  { %p399_p1 = pnand %p397_p0, %p394_p13 }
 0x14b   :  { %402 = shalt.err (!%p399_p1)
}
 0x14c   :  { %231 = dma.vmem_to_hbm [thread:$0]  %s226_s3, 512, %s501_s4, [#allocation4], %s408_s25, %s408_s25, %s409_s26  }
 0x14d   :  { %405 = dma.done.wait [#allocation4], 512  }
 0x14e   :  { %406 = vsyncadd [#allocation4], 4294966784 }
 0x14f   :  { %235 = vsyncpa [#allocation3], 1 }
 0x150   :  { %236 = vsyncpa [#allocation4], 1 }

</bundles_post_ra>
